<compile_context>
chip_gen: v7x
topology: tpu7x:2x2x1
jax: 0.10.0
libtpu: 0.0.40
codegen_flags: <defaults>
</compile_context>

<pallas_src>
import numpy as np

import jax
import jax.numpy as jnp
from jax.experimental import pallas as pl
from jax.experimental.pallas import tpu as pltpu

# Above the 16 MiB (v5e) / 32 MiB (v6e, v7x) default scoped limits, comfortably
# below v7x's 64 MiB physical VMEM.
_VMEM_LIMIT_BYTES = 48 * 1024 * 1024


def _round_up(n, m):
    return ((n + m - 1) // m) * m


def _pad2(a, rows, cols):
    return jnp.pad(a, ((0, rows - a.shape[0]), (0, cols - a.shape[1])))


# ----------------------------------------------------------------------------
# Kernel 1: one GIN layer on a (dst-row-tile, nonzero-src-block) grid.
#   acc   += adj_block(bf16) @ x_srcblock(bf16)      (f32 accumulation)
#   h      = acc + (1 + eps) * x_dst
#   out    = relu(relu(h @ W1 + b1) @ W2 + b2)       (only at last src block)
# ----------------------------------------------------------------------------
def gin_layer_kernel(col_ids_ref, nblk_ref, adj_ref, xsrc_ref, xdst_ref,
                     eps_ref, w1_ref, b1_ref, w2_ref, b2_ref, out_ref, acc_ref):
    i = pl.program_id(0)
    k = pl.program_id(1)

    @pl.when(k == 0)
    def _init():
        acc_ref[...] = jnp.zeros_like(acc_ref)

    # Skip padded (zero) adjacency blocks: only k < nblk[i] blocks are real.
    @pl.when(k < nblk_ref[i])
    def _accumulate():
        acc_ref[...] += jnp.dot(adj_ref[...], xsrc_ref[...],
                                preferred_element_type=jnp.float32)

    @pl.when(k == pl.num_programs(1) - 1)
    def _finalize():
        h = acc_ref[...] + (1.0 + eps_ref[0]) * xdst_ref[...].astype(jnp.float32)
        y = jnp.dot(h, w1_ref[...], preferred_element_type=jnp.float32) + b1_ref[...]
        y = jnp.maximum(y, 0.0)
        y = jnp.dot(y, w2_ref[...], preferred_element_type=jnp.float32) + b2_ref[...]
        out_ref[...] = jnp.maximum(y, 0.0).astype(out_ref.dtype)


def gin_layer(x_bf16, adj_bf16, col_ids, nblk, max_blocks, eps,
              w1, b1, w2, b2, *, tile_n, tile_s, h_pad):
    n_pad, f_in = x_bf16.shape
    assert n_pad % tile_n == 0 and n_pad % tile_s == 0
    assert tile_n % 16 == 0 and tile_s % 16 == 0   # bf16 sublane packing

    grid = (n_pad // tile_n, max_blocks)
    return pl.pallas_call(
        gin_layer_kernel,
        out_shape=jax.ShapeDtypeStruct((n_pad, h_pad), jnp.bfloat16),
        grid_spec=pltpu.PrefetchScalarGridSpec(
            num_scalar_prefetch=2,          # col_ids, nblk (block-CSR metadata)
            grid=grid,
            in_specs=[
                # adjacency block: dst tile i, src block col_ids[i, k]
                pl.BlockSpec((tile_n, tile_s),
                             lambda i, k, cid, nb: (i, cid[i, k])),
                # source activations for that block
                pl.BlockSpec((tile_s, f_in),
                             lambda i, k, cid, nb: (cid[i, k], 0)),
                # destination activations (self term), constant across k
                pl.BlockSpec((tile_n, f_in),
                             lambda i, k, cid, nb: (i, 0)),
                # eps scalar in SMEM
                pl.BlockSpec(memory_space=pltpu.MemorySpace.SMEM),
                # MLP weights (constant index -> fetched once)
                pl.BlockSpec((f_in, h_pad), lambda i, k, cid, nb: (0, 0)),
                pl.BlockSpec((1, h_pad), lambda i, k, cid, nb: (0, 0)),
                pl.BlockSpec((h_pad, h_pad), lambda i, k, cid, nb: (0, 0)),
                pl.BlockSpec((1, h_pad), lambda i, k, cid, nb: (0, 0)),
            ],
            out_specs=pl.BlockSpec((tile_n, h_pad),
                                   lambda i, k, cid, nb: (i, 0)),
            scratch_shapes=[pltpu.VMEM((tile_n, f_in), jnp.float32)],
        ),
        compiler_params=pltpu.CompilerParams(
            dimension_semantics=("parallel", "arbitrary"),
            vmem_limit_bytes=_VMEM_LIMIT_BYTES),
    )(col_ids, nblk, adj_bf16, x_bf16, x_bf16, eps, w1, b1, w2, b2)


# ----------------------------------------------------------------------------
# Kernel 2: global_add_pool + lin1 + ReLU + lin2, tiled over node tiles with a
# VMEM accumulator (no whole-graph-in-VMEM hazard).
# ----------------------------------------------------------------------------
def pool_mlp_kernel(pool_ref, h_ref, w1_ref, b1_ref, w2_ref, b2_ref,
                    out_ref, acc_ref):
    j = pl.program_id(0)

    @pl.when(j == 0)
    def _init():
        acc_ref[...] = jnp.zeros_like(acc_ref)

    acc_ref[...] += jnp.dot(pool_ref[...], h_ref[...],
                            preferred_element_type=jnp.float32)

    @pl.when(j == pl.num_programs(0) - 1)
    def _finalize():
        y1 = jnp.dot(acc_ref[...], w1_ref[...],
                     preferred_element_type=jnp.float32) + b1_ref[...]
        y1 = jnp.maximum(y1, 0.0)
        out_ref[...] = jnp.dot(y1, w2_ref[...],
                               preferred_element_type=jnp.float32) + b2_ref[...]


def pool_mlp(h_bf16, pool_bf16, w1, b1, w2, b2, *, tile_p):
    n_pad, h_pad = h_bf16.shape
    num_graphs = pool_bf16.shape[0]
    assert n_pad % tile_p == 0

    grid = (n_pad // tile_p,)
    return pl.pallas_call(
        pool_mlp_kernel,
        out_shape=jax.ShapeDtypeStruct((num_graphs, 1), jnp.float32),
        grid_spec=pltpu.PrefetchScalarGridSpec(
            num_scalar_prefetch=0,
            grid=grid,
            in_specs=[
                pl.BlockSpec((num_graphs, tile_p), lambda j: (0, j)),
                pl.BlockSpec((tile_p, h_pad), lambda j: (j, 0)),
                pl.BlockSpec((h_pad, h_pad), lambda j: (0, 0)),
                pl.BlockSpec((1, h_pad), lambda j: (0, 0)),
                pl.BlockSpec((h_pad, 1), lambda j: (0, 0)),
                pl.BlockSpec((1, 1), lambda j: (0, 0)),
            ],
            out_specs=pl.BlockSpec((num_graphs, 1), lambda j: (0, 0)),
            scratch_shapes=[pltpu.VMEM((num_graphs, h_pad), jnp.float32)],
        ),
        compiler_params=pltpu.CompilerParams(
            dimension_semantics=("arbitrary",),
            vmem_limit_bytes=_VMEM_LIMIT_BYTES),
    )(pool_bf16, h_bf16, w1, b1, w2, b2)


# ----------------------------------------------------------------------------
# Host-side preprocessing: dense adjacency + block-CSR occupancy metadata.
# ----------------------------------------------------------------------------
def edge_index_to_adj(edge_index, num_nodes):
    src, dst = edge_index[0], edge_index[1]
    adj = jnp.zeros((num_nodes, num_nodes), jnp.float32)
    # scatter-ADD so parallel (duplicate) edges count their multiplicity, like
    # PyG's scatter-add aggregation.  adj[dst, src]; GINConv adds no self loops.
    adj = adj.at[dst, src].add(1.0)
    return adj


def _block_metadata(adj_padded, tile_n, tile_s):
    """Per-dst-tile list of nonzero source-column blocks (block-CSR)."""
    a = np.asarray(adj_padded)
    n = a.shape[0]
    nd, ns = n // tile_n, n // tile_s
    occ = a.reshape(nd, tile_n, ns, tile_s).any(axis=(1, 3))      # (nd, ns)
    nblk = occ.sum(axis=1).astype(np.int32)                       # (nd,)
    max_blocks = max(int(nblk.max()) if nd else 0, 1)
    col_ids = np.zeros((nd, max_blocks), np.int32)
    for i in range(nd):
        cols = np.nonzero(occ[i])[0]
        col_ids[i, :len(cols)] = cols
        if len(cols) and len(cols) < max_blocks:
            col_ids[i, len(cols):] = cols[-1]    # in-bounds padding (skipped)
    return jnp.asarray(col_ids), jnp.asarray(nblk), max_blocks


# ----------------------------------------------------------------------------
# Parameters and full forward
# ----------------------------------------------------------------------------
def init_params(key, num_features, hidden, num_layers):
    def gin_params(key, f_in):
        k1, k2, k3, k4 = jax.random.split(key, 4)
        w1 = jax.random.normal(k1, (f_in, hidden), jnp.float32) * 0.2
        b1 = jax.random.normal(k2, (1, hidden), jnp.float32) * 0.05
        w2 = jax.random.normal(k3, (hidden, hidden), jnp.float32) * 0.2
        b2 = jax.random.normal(k4, (1, hidden), jnp.float32) * 0.05
        eps = jnp.array([0.1], jnp.float32)          # train_eps=True learnable
        return (eps, w1, b1, w2, b2)

    keys = jax.random.split(key, num_layers + 2)
    return {
        "conv1": gin_params(keys[0], num_features),
        "convs": [gin_params(keys[i + 1], hidden) for i in range(num_layers - 1)],
        "lin1_w": jax.random.normal(keys[-2], (hidden, hidden), jnp.float32) * 0.2,
        "lin1_b": jnp.zeros((1, hidden), jnp.float32),
        "lin2_w": jax.random.normal(keys[-1], (hidden, 1), jnp.float32) * 0.2,
        "lin2_b": jnp.zeros((1, 1), jnp.float32),
    }


def _pick_tile_n(n_pad, want):
    want = max(16, min(want, n_pad))
    t = (want // 16) * 16
    while t > 16 and n_pad % t:
        t -= 16
    return t


def ginnet_forward(params, x, edge_index, edge_attr, batch, *,
                   num_graphs, tile_n=256):
    del edge_attr  # GINConv ignores edge_attr (matches the PyTorch forward)
    n = x.shape[0]
    hidden = params["lin1_w"].shape[0]
    h_pad = _round_up(hidden, 128)          # lane-dense hidden width

    adj = edge_index_to_adj(edge_index, n)

    # --- tiling: src blocks are full-width (small N) or 128-multiples ---
    tile_s = _round_up(n, 16) if n <= 256 else 256
    n_pad = _round_up(n, tile_s)
    tile_n = _pick_tile_n(n_pad, tile_n)

    if n_pad != n:
        x = jnp.pad(x, ((0, n_pad - n), (0, 0)))
        adj = jnp.pad(adj, ((0, n_pad - n), (0, n_pad - n)))
    adj_bf16 = adj.astype(jnp.bfloat16)     # exact for small edge counts

    # block-CSR metadata computed once from the graph structure (host-side),
    # reused by every layer (adjacency does not change across layers).
    col_ids, nblk, max_blocks = _block_metadata(adj, tile_n, tile_s)

    # --- GIN layers (activations carried bf16, hidden padded to 128) ---
    h = x.astype(jnp.bfloat16)
    for (eps, w1, b1, w2, b2) in [params["conv1"]] + list(params["convs"]):
        f_in = h.shape[1]
        w1p = _pad2(w1, f_in, h_pad)
        b1p = _pad2(b1, 1, h_pad)
        w2p = _pad2(w2, h_pad, h_pad)
        b2p = _pad2(b2, 1, h_pad)
        h = gin_layer(h, adj_bf16, col_ids, nblk, max_blocks, eps,
                      w1p, b1p, w2p, b2p,
                      tile_n=tile_n, tile_s=tile_s, h_pad=h_pad)

    # --- global_add_pool + lin1 + ReLU + lin2 (tiled epilogue) ---
    # Padded node rows have nonzero activations (MLP biases) but their pool
    # columns are zero, so they cannot affect the pooled result.
    pool = jax.nn.one_hot(batch, num_graphs, dtype=jnp.float32).T   # (B, N)
    if n_pad != n:
        pool = jnp.pad(pool, ((0, 0), (0, n_pad - n)))
    pool_bf16 = pool.astype(jnp.bfloat16)   # 0/1 -> exact
    tile_p = n_pad if n_pad <= 256 else 256

    lin1w = _pad2(params["lin1_w"], h_pad, h_pad)
    lin1b = _pad2(params["lin1_b"], 1, h_pad)
    lin2w = _pad2(params["lin2_w"], h_pad, 1)
    return pool_mlp(h, pool_bf16, lin1w, lin1b, lin2w, params["lin2_b"],
                    tile_p=tile_p)


# ----------------------------------------------------------------------------
# Pure-JAX reference.  The kernel stores activations in bf16 between layers,
# so the reference applies the same rounding at the same points; everything
# else (accumulation, MLP) is f32 in both.
# ----------------------------------------------------------------------------
def ginnet_forward_ref(params, x, edge_index, edge_attr, batch, *, num_graphs):
    del edge_attr

    def q(v):  # emulate the bf16 storage of activations between layers
        return v.astype(jnp.bfloat16).astype(jnp.float32)

    n = x.shape[0]
    adj = edge_index_to_adj(edge_index, n)
    h = q(x)
    for (eps, w1, b1, w2, b2) in [params["conv1"]] + list(params["convs"]):
        agg = adj @ h + (1.0 + eps[0]) * h
        y = jax.nn.relu(agg @ w1 + b1)
        h = q(jax.nn.relu(y @ w2 + b2))
    pool = jax.nn.one_hot(batch, num_graphs, dtype=jnp.float32).T
    pooled = pool @ h
    y1 = jax.nn.relu(pooled @ params["lin1_w"] + params["lin1_b"])
    return y1 @ params["lin2_w"] + params["lin2_b"]


# ----------------------------------------------------------------------------
if __name__ == "__main__":
    num_features = 8
    hidden_channels = 32
    num_layers = 3
    nodes_per_graph = 80
    num_graphs = 4
    N = nodes_per_graph * num_graphs        # 320 nodes

    key = jax.random.PRNGKey(0)
    kx, kp = jax.random.split(key)

    x = jax.random.normal(kx, (N, num_features), jnp.float32)

    # deterministic ring edges inside each graph (both directions)
    src_list, dst_list = [], []
    for g in range(num_graphs):
        off = g * nodes_per_graph
        for i in range(nodes_per_graph):
            j = (i + 1) % nodes_per_graph
            src_list += [off + i, off + j]
            dst_list += [off + j, off + i]
    edge_index = jnp.array([src_list, dst_list], dtype=jnp.int32)    # (2, 640)
    edge_attr = jnp.zeros((edge_index.shape[1], 1), jnp.float32)     # unused
    batch = jnp.repeat(jnp.arange(num_graphs, dtype=jnp.int32),
                       nodes_per_graph)

    params = init_params(kp, num_features, hidden_channels, num_layers)

    # tile_n=64 -> dst-tile grid of 8; src blocks of 256 -> block-CSR axis of 2
    # (some dst tiles touch 0, 1 or 2 src blocks -> exercises the sparse skip,
    #  the accumulation path and the pipeline).
    out = ginnet_forward(params, x, edge_index, edge_attr, batch,
                         num_graphs=num_graphs, tile_n=64)
    out = jax.block_until_ready(out)

    ref = ginnet_forward_ref(params, x, edge_index, edge_attr, batch,
                             num_graphs=num_graphs)
    assert out.shape == (num_graphs, 1)
    assert jnp.allclose(out, ref, atol=2e-3, rtol=2e-3), (out, ref)

    print("KERNEL_OK")
</pallas_src>

<mosaic_0001>
module attributes {stable_mosaic.version = 11 : i64} {
  func.func @gin_layer_kernel(%arg0: i32, %arg1: i32, %arg2: memref<8x2xi32, #tpu.memory_space<smem>>, %arg3: memref<8xi32, #tpu.memory_space<smem>>, %arg4: memref<64x256xbf16, #tpu.memory_space<vmem>>, %arg5: memref<256x8xbf16, #tpu.memory_space<vmem>>, %arg6: memref<64x8xbf16, #tpu.memory_space<vmem>>, %arg7: memref<1xf32, #tpu.memory_space<smem>>, %arg8: memref<8x128xf32, #tpu.memory_space<vmem>>, %arg9: memref<1x128xf32, #tpu.memory_space<vmem>>, %arg10: memref<128x128xf32, #tpu.memory_space<vmem>>, %arg11: memref<1x128xf32, #tpu.memory_space<vmem>>, %arg12: memref<64x128xbf16, #tpu.memory_space<vmem>>, %arg13: memref<64x8xf32, #tpu.memory_space<vmem>>) attributes {dimension_semantics = [#tpu.dimension_semantics<parallel>, #tpu.dimension_semantics<arbitrary>], iteration_bounds = array<i64: 8, 2>, scalar_prefetch = 2 : i64, scratch_operands = 1 : i64, tpu.core_type = #tpu.core_type<tc>, window_params = [{transform_indices = @transform_0, window_bounds = array<i64: 64, 256>}, {transform_indices = @transform_1, window_bounds = array<i64: 256, 8>}, {transform_indices = @transform_2, window_bounds = array<i64: 64, 8>}, {transform_indices = @transform_3, window_bounds = array<i64: 1>}, {pipeline_mode = #tpu.pipeline_mode<synchronous>, transform_indices = @transform_4, window_bounds = array<i64: 8, 128>}, {pipeline_mode = #tpu.pipeline_mode<synchronous>, transform_indices = @transform_5, window_bounds = array<i64: 1, 128>}, {pipeline_mode = #tpu.pipeline_mode<synchronous>, transform_indices = @transform_6, window_bounds = array<i64: 128, 128>}, {pipeline_mode = #tpu.pipeline_mode<synchronous>, transform_indices = @transform_7, window_bounds = array<i64: 1, 128>}, {transform_indices = @transform_8, window_bounds = array<i64: 64, 128>}]} {
    %c0_i32 = arith.constant 0 : i32
    %0 = arith.cmpi eq, %arg1, %c0_i32 : i32
    %1 = arith.extui %0 : i1 to i32
    %c0_i32_0 = arith.constant 0 : i32
    %2 = arith.cmpi ne, %1, %c0_i32_0 : i32
    scf.if %2 {
      %cst = arith.constant 0.000000e+00 : f32
      %11 = vector.broadcast %cst : f32 to vector<64x8xf32>
      %c0 = arith.constant 0 : index
      %c0_3 = arith.constant 0 : index
      %12 = vector.load %arg13[%c0, %c0_3] : memref<64x8xf32, #tpu.memory_space<vmem>>, vector<64x8xf32>
      tpu.vector_store %arg13[%c0, %c0_3], %11 {strides = array<i32>} : memref<64x8xf32, #tpu.memory_space<vmem>>, vector<64x8xf32>,
    } else {
    }
    %3 = arith.index_cast %arg0 : i32 to index
    %4 = memref.load %arg3[%3] : memref<8xi32, #tpu.memory_space<smem>>
    %5 = arith.cmpi slt, %arg1, %4 : i32
    %6 = arith.extui %5 : i1 to i32
    %c0_i32_1 = arith.constant 0 : i32
    %7 = arith.cmpi ne, %6, %c0_i32_1 : i32
    scf.if %7 {
      %c0 = arith.constant 0 : index
      %c0_3 = arith.constant 0 : index
      %11 = vector.load %arg13[%c0, %c0_3] : memref<64x8xf32, #tpu.memory_space<vmem>>, vector<64x8xf32>
      %c0_4 = arith.constant 0 : index
      %c0_5 = arith.constant 0 : index
      %12 = vector.load %arg4[%c0_4, %c0_5] : memref<64x256xbf16, #tpu.memory_space<vmem>>, vector<64x256xbf16>
      %c0_6 = arith.constant 0 : index
      %c0_7 = arith.constant 0 : index
      %13 = vector.load %arg5[%c0_6, %c0_7] : memref<256x8xbf16, #tpu.memory_space<vmem>>, vector<256x8xbf16>
      %cst = arith.constant dense<0.000000e+00> : vector<64x8xf32>
      %14 = tpu.matmul %12, %13, %cst {dimension_numbers = #tpu.dot_dimension_numbers<[1], [0], [0], [1], [0, 0, 1, 1], [], []>} : vector<64x256xbf16>, vector<256x8xbf16>, vector<64x8xf32> -> vector<64x8xf32>
      %15 = arith.addf %11, %14 : vector<64x8xf32>
      %c0_8 = arith.constant 0 : index
      %c0_9 = arith.constant 0 : index
      %16 = vector.load %arg13[%c0_8, %c0_9] : memref<64x8xf32, #tpu.memory_space<vmem>>, vector<64x8xf32>
      tpu.vector_store %arg13[%c0_8, %c0_9], %15 {strides = array<i32>} : memref<64x8xf32, #tpu.memory_space<vmem>>, vector<64x8xf32>,
    } else {
    }
    %c1_i32 = arith.constant 1 : i32
    %8 = arith.cmpi eq, %arg1, %c1_i32 : i32
    %9 = arith.extui %8 : i1 to i32
    %c0_i32_2 = arith.constant 0 : i32
    %10 = arith.cmpi ne, %9, %c0_i32_2 : i32
    scf.if %10 {
      %c0 = arith.constant 0 : index
      %c0_3 = arith.constant 0 : index
      %11 = vector.load %arg13[%c0, %c0_3] : memref<64x8xf32, #tpu.memory_space<vmem>>, vector<64x8xf32>
      %c0_4 = arith.constant 0 : index
      %12 = memref.load %arg7[%c0_4] : memref<1xf32, #tpu.memory_space<smem>>
      %cst = arith.constant 1.000000e+00 : f32
      %13 = arith.addf %cst, %12 : f32
      %c0_5 = arith.constant 0 : index
      %c0_6 = arith.constant 0 : index
      %14 = vector.load %arg6[%c0_5, %c0_6] : memref<64x8xbf16, #tpu.memory_space<vmem>>, vector<64x8xbf16>
      %15 = arith.extf %14 : vector<64x8xbf16> to vector<64x8xf32>
      %16 = vector.broadcast %13 : f32 to vector<64x8xf32>
      %17 = arith.mulf %16, %15 : vector<64x8xf32>
      %18 = arith.addf %11, %17 : vector<64x8xf32>
      %c0_7 = arith.constant 0 : index
      %c0_8 = arith.constant 0 : index
      %19 = vector.load %arg8[%c0_7, %c0_8] : memref<8x128xf32, #tpu.memory_space<vmem>>, vector<8x128xf32>
      %cst_9 = arith.constant dense<0.000000e+00> : vector<64x128xf32>
      %20 = tpu.matmul %18, %19, %cst_9 {dimension_numbers = #tpu.dot_dimension_numbers<[1], [0], [0], [1], [0, 0, 1, 1], [], []>} : vector<64x8xf32>, vector<8x128xf32>, vector<64x128xf32> -> vector<64x128xf32>
      %c0_10 = arith.constant 0 : index
      %c0_11 = arith.constant 0 : index
      %21 = vector.load %arg9[%c0_10, %c0_11] : memref<1x128xf32, #tpu.memory_space<vmem>>, vector<1x128xf32>
      %22 = vector.broadcast %21 : vector<1x128xf32> to vector<64x128xf32>
      %23 = arith.addf %20, %22 : vector<64x128xf32>
      %cst_12 = arith.constant 0.000000e+00 : f32
      %24 = vector.broadcast %cst_12 : f32 to vector<64x128xf32>
      %25 = arith.maximumf %23, %24 : vector<64x128xf32>
      %c0_13 = arith.constant 0 : index
      %c0_14 = arith.constant 0 : index
      %26 = vector.load %arg10[%c0_13, %c0_14] : memref<128x128xf32, #tpu.memory_space<vmem>>, vector<128x128xf32>
      %cst_15 = arith.constant dense<0.000000e+00> : vector<64x128xf32>
      %27 = tpu.matmul %25, %26, %cst_15 {dimension_numbers = #tpu.dot_dimension_numbers<[1], [0], [0], [1], [0, 0, 1, 1], [], []>} : vector<64x128xf32>, vector<128x128xf32>, vector<64x128xf32> -> vector<64x128xf32>
      %c0_16 = arith.constant 0 : index
      %c0_17 = arith.constant 0 : index
      %28 = vector.load %arg11[%c0_16, %c0_17] : memref<1x128xf32, #tpu.memory_space<vmem>>, vector<1x128xf32>
      %29 = vector.broadcast %28 : vector<1x128xf32> to vector<64x128xf32>
      %30 = arith.addf %27, %29 : vector<64x128xf32>
      %cst_18 = arith.constant 0.000000e+00 : f32
      %31 = vector.broadcast %cst_18 : f32 to vector<64x128xf32>
      %32 = arith.maximumf %30, %31 : vector<64x128xf32>
      %33 = arith.truncf %32 : vector<64x128xf32> to vector<64x128xbf16>
      %c0_19 = arith.constant 0 : index
      %c0_20 = arith.constant 0 : index
      %34 = vector.load %arg12[%c0_19, %c0_20] : memref<64x128xbf16, #tpu.memory_space<vmem>>, vector<64x128xbf16>
      tpu.vector_store %arg12[%c0_19, %c0_20], %33 {strides = array<i32>} : memref<64x128xbf16, #tpu.memory_space<vmem>>, vector<64x128xbf16>,
    } else {
    }
    return
  }
  func.func @transform_0(%arg0: i32, %arg1: i32, %arg2: memref<8x2xi32, #tpu.memory_space<smem>>, %arg3: memref<8xi32, #tpu.memory_space<smem>>) -> (i32, i32) {
    %0 = arith.index_cast %arg0 : i32 to index
    %1 = arith.index_cast %arg1 : i32 to index
    %2 = memref.load %arg2[%0, %1] : memref<8x2xi32, #tpu.memory_space<smem>>
    %c0_i32 = arith.constant 0 : i32
    return %arg0, %2 : i32, i32
  }
  func.func @transform_1(%arg0: i32, %arg1: i32, %arg2: memref<8x2xi32, #tpu.memory_space<smem>>, %arg3: memref<8xi32, #tpu.memory_space<smem>>) -> (i32, i32) {
    %0 = arith.index_cast %arg0 : i32 to index
    %1 = arith.index_cast %arg1 : i32 to index
    %2 = memref.load %arg2[%0, %1] : memref<8x2xi32, #tpu.memory_space<smem>>
    %c0_i32 = arith.constant 0 : i32
    %c0_i32_0 = arith.constant 0 : i32
    return %2, %c0_i32 : i32, i32
  }
  func.func @transform_2(%arg0: i32, %arg1: i32, %arg2: memref<8x2xi32, #tpu.memory_space<smem>>, %arg3: memref<8xi32, #tpu.memory_space<smem>>) -> (i32, i32) {
    %c0_i32 = arith.constant 0 : i32
    %c0_i32_0 = arith.constant 0 : i32
    return %arg0, %c0_i32 : i32, i32
  }
  func.func @transform_3(%arg0: i32, %arg1: i32, %arg2: memref<8x2xi32, #tpu.memory_space<smem>>, %arg3: memref<8xi32, #tpu.memory_space<smem>>) -> i32 {
    %c0_i32 = arith.constant 0 : i32
    %c0_i32_0 = arith.constant 0 : i32
    return %c0_i32 : i32
  }
  func.func @transform_4(%arg0: i32, %arg1: i32, %arg2: memref<8x2xi32, #tpu.memory_space<smem>>, %arg3: memref<8xi32, #tpu.memory_space<smem>>) -> (i32, i32) {
    %c0_i32 = arith.constant 0 : i32
    %c0_i32_0 = arith.constant 0 : i32
    %c0_i32_1 = arith.constant 0 : i32
    return %c0_i32, %c0_i32_0 : i32, i32
  }
  func.func @transform_5(%arg0: i32, %arg1: i32, %arg2: memref<8x2xi32, #tpu.memory_space<smem>>, %arg3: memref<8xi32, #tpu.memory_space<smem>>) -> (i32, i32) {
    %c0_i32 = arith.constant 0 : i32
    %c0_i32_0 = arith.constant 0 : i32
    %c0_i32_1 = arith.constant 0 : i32
    return %c0_i32, %c0_i32_0 : i32, i32
  }
  func.func @transform_6(%arg0: i32, %arg1: i32, %arg2: memref<8x2xi32, #tpu.memory_space<smem>>, %arg3: memref<8xi32, #tpu.memory_space<smem>>) -> (i32, i32) {
    %c0_i32 = arith.constant 0 : i32
    %c0_i32_0 = arith.constant 0 : i32
    %c0_i32_1 = arith.constant 0 : i32
    return %c0_i32, %c0_i32_0 : i32, i32
  }
  func.func @transform_7(%arg0: i32, %arg1: i32, %arg2: memref<8x2xi32, #tpu.memory_space<smem>>, %arg3: memref<8xi32, #tpu.memory_space<smem>>) -> (i32, i32) {
    %c0_i32 = arith.constant 0 : i32
    %c0_i32_0 = arith.constant 0 : i32
    %c0_i32_1 = arith.constant 0 : i32
    return %c0_i32, %c0_i32_0 : i32, i32
  }
  func.func @transform_8(%arg0: i32, %arg1: i32, %arg2: memref<8x2xi32, #tpu.memory_space<smem>>, %arg3: memref<8xi32, #tpu.memory_space<smem>>) -> (i32, i32) {
    %c0_i32 = arith.constant 0 : i32
    %c0_i32_0 = arith.constant 0 : i32
    return %arg0, %c0_i32 : i32, i32
  }
}

</mosaic_0001>

<bundles_post_ra>
// kernel: tpu_custom_call.1
= control target key start
LH: loop header
LB: loop body
LE: loop exit
PB: predicated region body
PF: predicated region fallthrough
CT: control target
= control target key end

     0   :  { %s2354_s0 = inlined_call_operand.vmem [shape: s32[8,2], index: 0, kind: input, shape index: {}]   ;;  %s2355_s2 = inlined_call_operand.hbm [shape: bf16[512,512], index: 2, kind: input, shape index: {}]   ;;  %s2356_s3 = inlined_call_operand.vmem [shape: bf16[512,8], index: 3, kind: input, shape index: {}]   ;;  %s2357_s4 = inlined_call_operand.vmem [shape: bf16[512,8], index: 4, kind: input, shape index: {}]   ;;  %s2358_s6 = inlined_call_operand.vmem [shape: f32[8,128], index: 6, kind: input, shape index: {}]   ;;  %s2359_s7 = inlined_call_operand.vmem [shape: f32[1,128], index: 7, kind: input, shape index: {}]   ;;  %s2360_s8 = inlined_call_operand.vmem [shape: f32[128,128], index: 8, kind: input, shape index: {}]   ;;  %s2361_s9 = inlined_call_operand.vmem [shape: f32[1,128], index: 9, kind: input, shape index: {}]   ;;  %s2362_s10 = inlined_call_operand.hbm [shape: bf16[512,128], index: 10, kind: output, shape index: {}]   ;;  %s2363_s1 = inlined_call_operand.vmem [shape: s32[8], index: 1, kind: input, shape index: {}]   ;;  %s2364_s5 = inlined_call_operand.<no memory space> [shape: f32[1], index: 5, kind: input, shape index: {}]  }
   0x1   :  { %2375 = sst [smem:[#allocation25_spill]] %s2362_s10  ;;  %s15_s15 = sshll.u32 %s2354_s0, 4  ;;  %s16_s15 = int_to_ptr.vmem [resolvable:$true] %s15_s15 }
   0x2   :  { %s19_s18 = sshll.u32 %s2363_s1, 4  ;;  %s1729_s19 = scalar_lea.vmem %s16_s15, 128  ;;  %s20_s18 = int_to_ptr.vmem [resolvable:$true] %s19_s18 }
   0x3   :  { %p1730_p0 = scmp.ne.s32.totalorder %s16_s15, %s1729_s19  ;;  %p1734_p1 = scmp.lt.s32.totalorder %s16_s15, %s16_s15 }
   0x4   :  { %p1735_p2 = scmp.lt.s32.totalorder %s1729_s19, %s1729_s19 }
   0x6   :  { %p1736_p3 = por %p1735_p2, %p1734_p1 }
   0x8   :  { %p1737_p4 = pnand %p1736_p3, %p1730_p0 }
   0xa   :  { %1740 = shalt.err (!%p1737_p4)  }
   0xb   :  { %s1909_s20 = smov [#allocation4]   ;;  %s1741_s21 = scalar_lea.vmem %s20_s18, 16 }
   0xc   :  { %18 = dma.vmem_to_smem %s16_s15, 128, %s1909_s20, [#allocation3] }
   0xd   :  { %p1742_p5 = scmp.ne.s32.totalorder %s20_s18, %s1741_s21  ;;  %p1746_p6 = scmp.lt.s32.totalorder %s20_s18, %s20_s18 }
   0xe   :  { %p1747_p7 = scmp.lt.s32.totalorder %s1741_s21, %s1741_s21 }
  0x10   :  { %p1748_p8 = por %p1747_p7, %p1746_p6 }
  0x12   :  { %p1749_p9 = pnand %p1748_p8, %p1742_p5 }
  0x14   :  { %1752 = shalt.err (!%p1749_p9)  }
  0x15   :  { %s1910_s0 = smov [#allocation5]   ;;  %23 = sst [smem:[#allocation6]] %s2364_s5 }
  0x16   :  { %22 = dma.vmem_to_smem %s20_s18, 16, %s1910_s0, [#allocation3] }
  0x17   :  { %1855 = dma.done.wait [#allocation3], 144 }
  0x18   :  { %1856 = vsyncadd [#allocation3], 4294967152 }
  0x19   :  { %25 = sfence }
  0x1a   :  { %26 = vsyncpa [#allocation8], 0 }
  0x1b   :  { %28 = vsyncpa [#allocation8 + $0x1], 0 }
  0x1c   :  { %29 = vsyncpa [#allocation9], 0 }
  0x1d   :  { %31 = vsyncpa [#allocation9 + $0x1], 0  ;;  %s1983_s23 = smov 0   ;;  %s1985_s24 = smov 0  }
  0x1e   :  { %s1987_s25 = smov 0   ;;  %s1989_s26 = smov 0  }
  0x1f   :  { %s1991_s27 = smov 0   ;;  %s1993_s28 = smov 0  }
  0x20   :  { %s1995_s5 = smov 0   ;;  %s1997_s29 = smov 0  }
  0x21   :  { %s1999_s30 = smov 0   ;;  %s2001_s11 = smov 0  }
  0x22   :  { %s2003_s12 = smov 0  }
  0x23 LB: > { %2376 = sst [smem:[#allocation16_spill]] %s1867_s23  ;;  %s46_s14 = sadd.s32 1, %s1899_s30  ;;  %s1907_s12 = sphi %s2003_s12, %s37_s12   ;;  %s1903_s11 = sphi %s2001_s11, %s2411_s11   ;;  %s1899_s30 = sphi %s1999_s30, %s2404_s30   ;;  %s1895_s29 = sphi %s1997_s29, %s2410_s29   ;;  %s1891_s5 = sphi %s1995_s5, %s2403_s5   ;;  %s1887_s28 = sphi %s1993_s28, %s2402_s28   ;;  %s1883_s27 = sphi %s1991_s27, %s2409_s27   ;;  %s1879_s26 = sphi %s1989_s26, %s2408_s26   ;;  %s1875_s25 = sphi %s1987_s25, %s2400_s25   ;;  %s1871_s24 = sphi %s1985_s24, %s2407_s24   ;;  %s1867_s23 = sphi %s1983_s23, %s2406_s23  }
  0x24   : > { %2377 = sst [smem:[#allocation17_spill]] %s1875_s25  ;;  %s49_s15 = sadd.s32 1, %s1903_s11 }
  0x25   : > { %2378 = sst [smem:[#allocation18_spill]] %s1887_s28  ;;  %p47_p10 = scmp.ge.s32.totalorder %s46_s14, 2 }
  0x26   : > { %2379 = sst [smem:[#allocation19_spill]] %s1899_s30  ;;  %s53_s16 = sshra.s32 %s1899_s30, 7 }
  0x27   : > { %s55_s17 = sadd.s32 %s1903_s11, %s53_s16  ;;  %s58_s18 = sand.u32 127, %s1899_s30 }
  0x28   : > { %s2413_s14 = smov (%p47_p10, %s46_s14), 0  ;;  %s2415_s15 = smov (!%p47_p10, %s49_s15), %s1903_s11 }
  0x29   : > { %2380 = sst [smem:[#allocation20_spill]] %s2413_s14  ;;  %s1269_s19 = sadd.s32 4294967294, %s1907_s12  }
  0x2a   : > { %s1270_s20 = sshll.u32 %s55_s17, 7  ;;  %p51_p11 = scmp.ge.s32.totalorder %s2415_s15, 8 }
  0x2b   : > { %s2048_s21 = sadd.s32 %s1270_s20, %s58_s18  ;;  %s61_s1 = sshra.s32 %s2413_s14, 7 }
  0x2c   : > { %s60_s0 = sld [smem:[#allocation4 + %s2048_s21]]  ;;  %s2417_s15 = smov (%p51_p11, %s2415_s15), 0 }
  0x2d   : > { %2381 = sst [smem:[#allocation21_spill]] %s2417_s15  ;;  %s66_s22 = sand.u32 127, %s2413_s14 }
  0x2e   : > { %s74_s16 = sadd.s32 1, %s1887_s28  ;;  %s63_s13 = sadd.s32 %s61_s1, %s2417_s15 }
  0x2f   : > { %p81_p12 = scmp.ne.s32.totalorder %s1887_s28, %s1883_s27  ;;  %s1271_s17 = sshll.u32 %s63_s13, 7 }
  0x30   : > { %s69_s18 = ssub.s32 %s1903_s11, %s2417_s15  ;;  %s67_s20 = sadd.s32 %s1271_s17, %s66_s22 }
  0x31   : > { %p87_p13 = scmp.ne.s32.totalorder %s1883_s27, %s1879_s26  ;;  %s68_s30 = sld [smem:[#allocation4 + %s67_s20]] }
  0x32   : > { %p82_p0 = scmp.eq.s32.totalorder %s1907_s12, 0  ;;  %s2382_s10 = sadd.s32 4294967295, %s1907_s12  }
  0x33   : > { %p88_p1 = scmp.eq.s32.totalorder %s2382_s10, 0  ;;  %p271_p2 = scmp.eq.s32.totalorder %s69_s18, 0 }
  0x34   : > { %s273_s14 = sadd.s32 1, %s1875_s25  ;;  %p283_p3 = scmp.ne.s32.totalorder %s1875_s25, %s1871_s24 }
  0x35   : > { %p2069_p4 = por %p88_p1, %p87_p13  ;;  %s2384_s13 = smov %s2382_s10 }
  0x36   : > { %p284_p5 = scmp.eq.s32.totalorder %s2384_s13, 15  ;;  %p289_p7 = scmp.ne.s32.totalorder %s1871_s24, %s1867_s23 }
  0x37   : > { %s2383_s1 = scalar_select %p2069_p4, 1, 0 }
  0x38   : > { %s2076_s26 = scalar_select %p271_p2, %s1875_s25, %s273_s14  }
  0x39   : > { %p2078_p6 = por %p284_p5, %p283_p3  ;;  %s70_s10 = ssub.s32 %s60_s0, %s68_s30 }
  0x3a   : > { %2385 = sst [smem:[#allocation22_spill]] %s2076_s26  ;;  %p290_p8 = scmp.eq.s32.totalorder %s1269_s19, 15 }
  0x3b   : > { %s2386_s22 = scalar_select %p2078_p6, 1, 0 }
  0x3c   : > { %s71_s17 = sor.u32 %s70_s10, %s69_s18  ;;  %p2084_p10 = por %p290_p8, %p289_p7 }
  0x3d   : > { %p72_p9 = scmp.eq.s32.totalorder %s71_s17, 0  ;;  %p83_p11 = por %p82_p0, %p81_p12 }
  0x3e   : > { %s2387_s20 = scalar_select %p2084_p10, 1, 0 }
  0x3f   : > { %s325_s14 = sand.u32 1, %s1887_s28   ;;  %p1603_p13 = scmp.lt.s32.totalorder %s1907_s12, 16 }
  0x40   : > { %2388 = sst [smem:[#allocation23_spill]] %s2387_s20  ;;  %s1276_s15 = sshll.u32 %s325_s14, 6 }
  0x41   : > { %s2095_s13 = scalar_select %p72_p9, %s1887_s28, %s74_s16  }
  0x42   : > { %s1587_s26 = scalar_select %p83_p11, [#allocation4], [#allocation11] }
  0x43   : > { %2389 = sst [smem:[#allocation24_spill]] %s2095_s13  ;;  %s2419_s21 = smov (!%p83_p11, %s2048_s21), 0 }
  0x44   : > { %s2421_s26 = smov (!%p1603_p13, %s1587_s26), [#allocation12]  ;;  %s2423_s21 = smov (!%p1603_p13, %s2419_s21), 0 }
  0x45   : > { %p2099_p1 = pnand %p1603_p13, %p83_p11  ;;  %s337_s19 = sld [smem:[%s2421_s26 + %s2423_s21]] }
  0x46   : > { %s329_s0 = scalar_lea.vmem [#allocation7], %s1276_s15  ;;  %p1282_p2 = scmp.ge.s32.totalorder %s1907_s12, 1 }
  0x47   : > { %s347_s18 = sshll.u32 %s329_s0, 4  ;;  %p389_p12 = scmp.lt.s32.totalorder %s1907_s12, 17  ;;  %s2106_s18 = int_to_ptr.vmem [resolvable:$true] %s347_s18 }
  0x48   : > { %s1340_s10 = sshll.u32 %s1903_s11, 5  ;;  %s2117_s15 = scalar_lea.sflag [#allocation8], %s325_s14 }
  0x49   : > { %p2108_p0 = pnand %p1282_p2, %p389_p12  ;;  %p1755_p5 = pneg %p2099_p1 }
  0x4a   : > { %s1758_s25 = scalar_lea.hbm %s2355_s2, 16384 }
  0x4b   : > { %s1279_s17 = sshll.u32 %s337_s19, 1 }
  0x4c   : > { %s344_s13 = sadd.s32 %s1340_s10, %s1279_s17 }
  0x4d   : > { %s1281_s28 = sshll.u32 %s344_s13, 6 }
  0x4e   : > { %s2115_s23 = scalar_lea.hbm %s2355_s2, %s1281_s28 }
  0x4f   : > { %s1753_s21 = scalar_lea.hbm %s2115_s23, 1024  ;;  %p1759_p9 = scmp.lt.u32.totalorder %s2115_s23, %s2355_s2 }
  0x50   : > { %p1754_p3 = scmp.ne.s32.totalorder %s2115_s23, %s1753_s21  ;;  %p1760_p11 = scmp.lt.u32.totalorder %s1758_s25, %s1753_s21 }
  0x51   : > { %p1762_p2 = scmp.lt.u32.totalorder %s1753_s21, %s2115_s23 }
  0x52   : > { %p1756_p7 = pnand %p1755_p5, %p1754_p3  ;;  %p1761_p13 = por %p1760_p11, %p1759_p9 }
  0x54   : > { %p1757_p8 = pneg %p1756_p7  ;;  %p1763_p12 = por %p1762_p2, %p1761_p13 }
  0x56   : > { %p1764_p10 = pnand %p1763_p12, %p1757_p8 }
  0x58   : > { %1767 = shalt.err (!%p1764_p10)
}
  0x59   : > { %s1768_s14 = scalar_lea.vmem %s2106_s18, 1024  ;;  %s1911_s19 = smov [#allocation7]  }
  0x5a   : > { %p1769_p3 = scmp.ne.s32.totalorder %s2106_s18, %s1768_s14  ;;  %s1773_s0 = sshll.u32 %s1911_s19, 4  ;;  %s1774_s0 = int_to_ptr.vmem [resolvable:$false] %s1773_s0 }
  0x5b   : > { %s1775_s10 = scalar_lea.vmem %s1774_s0, 2048  ;;  %p1776_p4 = scmp.lt.s32.totalorder %s2106_s18, %s1774_s0 }
  0x5c   : > { %p1771_p7 = pnand %p1769_p3, %p1755_p5  ;;  %p1777_p9 = scmp.lt.s32.totalorder %s1775_s10, %s1768_s14 }
  0x5e   : > { %p1772_p6 = pneg %p1771_p7  ;;  %p1778_p11 = por %p1777_p9, %p1776_p4 }
  0x60   : > { %p1779_p13 = pnand %p1778_p11, %p1772_p6 }
  0x62   : > { %1782 = shalt.err (!%p1779_p13)
}
  0x63   : > { %s1912_s17 = smov 256   ;;  %s1913_s21 = smov 128  }
  0x64   : > { %s1914_s26 = smov 8   ;;  %393 = sbr.rel (%p2108_p0) target bundleno = 885 (0x375), region = 52 }
  0x65   : > { %1598 = dma.hbm_to_vmem [thread:$0]  (!%p2099_p1), %s2115_s23, 1024, %s2106_s18, %s2117_s15, %s1912_s17, %s1913_s21, %s1914_s26  }
  0x66   : > { %s395_s13 = sand.u32 (!%p2108_p0), 1, %s1883_s27   ;;  %p2392_p4 = scmp.ne.s32.totalorder (!%p2108_p0), %s2383_s1, 0 }
  0x67   : > { %s1283_s25 = sshll.u32 (!%p2108_p0), %s395_s13, 6  ;;  %s396_s28 = scalar_lea.sflag (!%p2108_p0), [#allocation8], %s395_s13 }
  0x68   : > { %s2148_s20 = scalar_lea.vmem (!%p2108_p0), [#allocation7], %s1283_s25 }
  0x6b   : > { %1858 = dma.done.wait (%p2392_p4), %s396_s28, 1024  }
  0x6c   : > { %1860 = vsyncadd (%p2392_p4), %s396_s28, 4294966272  ;;  %s460_s23 = sshra.s32 %s1891_s5, 7  ;;  %s465_s30 = sand.u32 127, %s1891_s5 }
  0x6d   : > { %s462_s18 = sadd.s32 %s1895_s29, %s460_s23  ;;  %s447_s16 = sand.u32 1, %s1871_s24  }
  0x6e   : > { %s1285_s15 = sshll.u32 %s462_s18, 7  ;;  %s1284_s14 = sshll.u32 %s447_s16, 5 }
  0x6f   : > { %s466_s19 = sadd.s32 %s1285_s15, %s465_s30  ;;  %s1288_s10 = sshll.u32 %s1895_s29, 3 }
  0x70   : > { %s467_s0 = sld [smem:[#allocation4 + %s466_s19]]  ;;  %p483_p6 = scmp.lt.s32.totalorder %s1288_s10, 63 }
  0x71   : > { %s2171_s30 = scalar_lea.vmem [#allocation10], %s1284_s14  ;;  %p1290_p1 = scmp.ne.s32.totalorder %s1891_s5, 0 }
  0x72   : > { %s2425_s10 = smov (!%p483_p6, %s1288_s10), 63  ;;  %vm494_vm0 = vcmask (!%p1290_p1), 64512   ;;  %v1915_v0 = vmov (!%p1290_p1), 0.0  }
  0x73   : > { %s1289_s1 = sshll.u32 %s2425_s10, 2  ;;  %495 = vst.msk [vmem:[#allocation2] sm:$0xff] (!%p1290_p1), %vm494_vm0, %v1915_v0  ;;  %496 = vst.msk [vmem:[#allocation2 + $0x8] sm:$0xff] (!%p1290_p1), %vm494_vm0, %v1915_v0 }
  0x74   : > { %s2164_s13 = scalar_lea.vmem %s2357_s4, %s1289_s1  ;;  %497 = vst.msk [vmem:[#allocation2 + $0x10] sm:$0xff] (!%p1290_p1), %vm494_vm0, %v1915_v0  ;;  %498 = vst.msk [vmem:[#allocation2 + $0x18] sm:$0xff] (!%p1290_p1), %vm494_vm0, %v1915_v0 }
  0x75   : > { %493 = sbr.rel (%p1290_p1) target bundleno = 124 (0x7c), region = 60  ;;  %499 = vst.msk [vmem:[#allocation2 + $0x20] sm:$0xff] (!%p1290_p1), %vm494_vm0, %v1915_v0  ;;  %500 = vst.msk [vmem:[#allocation2 + $0x28] sm:$0xff] (!%p1290_p1), %vm494_vm0, %v1915_v0 }
  0x76   : > { %s1286_s17 = sshll.u32 %s467_s0, 5  ;;  %501 = vst.msk [vmem:[#allocation2 + $0x30] sm:$0xff] (!%p1290_p1), %vm494_vm0, %v1915_v0  ;;  %502 = vst.msk [vmem:[#allocation2 + $0x38] sm:$0xff] (!%p1290_p1), %vm494_vm0, %v1915_v0 }
  0x77   : > { %p469_p10 = scmp.lt.s32.totalorder %s1286_s17, 63 }
  0x79   : > { %s2427_s17 = smov (!%p469_p10, %s1286_s17), 63 }
  0x7a   : > { %s1287_s25 = sshll.u32 %s2427_s17, 2 }
  0x7b   : > { %s2169_s18 = scalar_lea.vmem %s2356_s3, %s1287_s25 }
  0x7c PF: > { %s503_s15 = sld [smem:[#allocation5 + %s1895_s29]] }
  0x82   : > { %p1291_p0 = scmp.ge.s32.totalorder %s1891_s5, %s503_s15 }
  0x83   : > { %v1701_v1 = vld [vmem:[%s2169_s18 + $0x40] sm:$0xff] (!%p1291_p0)   ;;  %v1703_v3 = vld [vmem:[%s2169_s18 + $0x48] sm:$0xff] (!%p1291_p0)   ;;  %v1705_v5 = vld [vmem:[%s2169_s18 + $0x50] sm:$0xff] (!%p1291_p0)   ;;  %vm765_vm1 = vcmask (!%p1291_p0), 64512  }
  0x84   : > { %507 = sbr.rel (%p1291_p0) target bundleno = 392 (0x188), region = 64  ;;  %v1702_v2 = vld [vmem:[%s2169_s18] sm:$0xff] (!%p1291_p0)   ;;  %1392 = vmatprep.subr.bf16.mxu0 (!%p1291_p0), %v1701_v1  ;;  %1555 = vmatprep.subr.bf16.mxu1 (!%p1291_p0), %v1701_v1  ;;  %v1704_v4 = vld [vmem:[%s2169_s18 + $0x8] sm:$0xff] (!%p1291_p0)   ;;  %v1706_v6 = vld [vmem:[%s2169_s18 + $0x10] sm:$0xff] (!%p1291_p0)  }
  0x85   : > { %1393 = vmatpush3.bf16.msra.mxu0 (!%p1291_p0), %v1702_v2  ;;  %1563 = vmatpush3.bf16.msra.mxu1 (!%p1291_p0), %v1702_v2  ;;  %v1707_v7 = vld [vmem:[%s2169_s18 + $0x58] sm:$0xff] (!%p1291_p0)   ;;  %v1709_v9 = vld [vmem:[%s2169_s18 + $0x60] sm:$0xff] (!%p1291_p0)   ;;  %v1711_v11 = vld [vmem:[%s2169_s18 + $0x68] sm:$0xff] (!%p1291_p0)  }
  0x86   : > { %1394 = vmatprep.subr.bf16.mxu0 (!%p1291_p0), %v1703_v3  ;;  %1556 = vmatprep.subr.bf16.mxu1 (!%p1291_p0), %v1703_v3  ;;  %v1708_v8 = vld [vmem:[%s2169_s18 + $0x18] sm:$0xff] (!%p1291_p0)   ;;  %v1710_v10 = vld [vmem:[%s2169_s18 + $0x20] sm:$0xff] (!%p1291_p0)   ;;  %v1712_v14 = vld [vmem:[%s2169_s18 + $0x28] sm:$0xff] (!%p1291_p0)  }
  0x87   : > { %v1719_v12 = vld [vmem:[%s2148_s20 + $0x4] ss:$8 sps:$4 sm:$0xff] (!%p1291_p0)   ;;  %v1713_v15 = vld [vmem:[%s2169_s18 + $0x70] sm:$0xff] (!%p1291_p0)   ;;  %v1715_v17 = vld [vmem:[%s2169_s18 + $0x78] sm:$0xff] (!%p1291_p0)  }
  0x88   : > { %v1722_v13 = vld [vmem:[%s2148_s20 + $0x24] ss:$8 sps:$4 sm:$0xff] (!%p1291_p0)   ;;  %724 = vmatprep.mubr.bf16.mxu0 (!%p1291_p0), %v1719_v12  ;;  %v1714_v16 = vld [vmem:[%s2169_s18 + $0x30] sm:$0xff] (!%p1291_p0)   ;;  %v1716_v18 = vld [vmem:[%s2169_s18 + $0x38] sm:$0xff] (!%p1291_p0)  }
  0x89   : > { %1395 = vmatpush3.bf16.msra.mxu0 (!%p1291_p0), %v1704_v4  ;;  %1564 = vmatpush3.bf16.msra.mxu1 (!%p1291_p0), %v1704_v4  ;;  %v1717_v19 = vld [vmem:[%s2148_s20] ss:$8 sps:$4 sm:$0xff] (!%p1291_p0)   ;;  %v1723_v21 = vld [vmem:[%s2148_s20 + $0x14] ss:$8 sps:$4 sm:$0xff] (!%p1291_p0)   ;;  %v1727_v23 = vld [vmem:[%s2148_s20 + $0x10] ss:$8 sps:$4 sm:$0xff] (!%p1291_p0)  }
  0x8a   : > { %1396 = vmatprep.subr.bf16.mxu0 (!%p1291_p0), %v1705_v5  ;;  %1557 = vmatprep.subr.bf16.mxu1 (!%p1291_p0), %v1705_v5  ;;  %v1720_v20 = vld [vmem:[%s2148_s20 + $0x20] ss:$8 sps:$4 sm:$0xff] (!%p1291_p0)   ;;  %v1725_v22 = vld [vmem:[%s2148_s20 + $0x34] ss:$8 sps:$4 sm:$0xff] (!%p1291_p0)   ;;  %v1728_v24 = vld [vmem:[%s2148_s20 + $0x30] ss:$8 sps:$4 sm:$0xff] (!%p1291_p0)  }
  0x8b   : > { %740 = vmatprep.mubr.bf16.mxu1 %v1722_v13  ;;  %v508_v27 = vld [vmem:[#allocation2] sm:$0xff]  ;;  %v509_v35 = vld [vmem:[#allocation2 + $0x8] sm:$0xff]  ;;  %v510_v47 = vld [vmem:[#allocation2 + $0x10] sm:$0xff] }
  0x8c   : > { %v512_v29 = vld [vmem:[#allocation2 + $0x20] sm:$0xff]  ;;  %v513_v37 = vld [vmem:[#allocation2 + $0x28] sm:$0xff]  ;;  %v514_v49 = vld [vmem:[#allocation2 + $0x30] sm:$0xff] }
  0x8d   : > { %1397 = vmatpush3.bf16.msra.mxu0 %v1706_v6  ;;  %1565 = vmatpush3.bf16.msra.mxu1 %v1706_v6  ;;  %v511_v55 = vld [vmem:[#allocation2 + $0x18] sm:$0xff] }
  0x8e   : > { %1398 = vmatprep.subr.bf16.mxu0 %v1707_v7  ;;  %1558 = vmatprep.subr.bf16.mxu1 %v1707_v7  ;;  %v515_v57 = vld [vmem:[#allocation2 + $0x38] sm:$0xff] }
  0x91   : > { %1399 = vmatpush3.bf16.msra.mxu0 %v1708_v8  ;;  %1566 = vmatpush3.bf16.msra.mxu1 %v1708_v8 }
  0x92   : > { %1400 = vmatprep.subr.bf16.mxu0 %v1709_v9  ;;  %1559 = vmatprep.subr.bf16.mxu1 %v1709_v9 }
  0x95   : > { %1401 = vmatpush3.bf16.msra.mxu0 %v1710_v10  ;;  %1567 = vmatpush3.bf16.msra.mxu1 %v1710_v10 }
  0x96   : > { %1402 = vmatprep.subr.bf16.mxu0 %v1711_v11  ;;  %1560 = vmatprep.subr.bf16.mxu1 %v1711_v11 }
  0x99   : > { %1403 = vmatpush3.bf16.msra.mxu0 %v1712_v14  ;;  %1568 = vmatpush3.bf16.msra.mxu1 %v1712_v14 }
  0x9a   : > { %1404 = vmatprep.subr.bf16.mxu0 %v1713_v15  ;;  %1561 = vmatprep.subr.bf16.mxu1 %v1713_v15 }
  0x9d   : > { %1405 = vmatpush3.bf16.msra.mxu0 %v1714_v16  ;;  %1569 = vmatpush3.bf16.msra.mxu1 %v1714_v16 }
  0x9e   : > { %1406 = vmatprep.subr.bf16.mxu0 %v1715_v17  ;;  %1562 = vmatprep.subr.bf16.mxu1 %v1715_v17 }
  0xa1   : > { %1407 = vmatpush3.bf16.msra.mxu0 %v1716_v18  ;;  %1570 = vmatpush3.bf16.msra.mxu1 %v1716_v18 }
  0xa4   : > { %725 = vmatmul.mubr.bf16.vlgmr.msra.gmra.mrb[0].mxu0 %v1717_v19  ;;  %741 = vmatmul.mubr.bf16.vlgmr.msra.gmra.mrb[0].mxu1 %v1720_v20 }
  0xa5   : > { %732 = vmatprep.mubr.bf16.mxu0 %v1723_v21  ;;  %748 = vmatprep.mubr.bf16.mxu1 %v1725_v22 }
  0xac   : > { %733 = vmatmul.mubr.bf16.gmra.mrb[4].mxu0 %v1727_v23  ;;  %749 = vmatmul.mubr.bf16.gmra.mrb[4].mxu1 %v1728_v24 }
 0x177   : > { %v1408_v25 = vpop.f32.mrb[0].mxu0  ;;  %v1420_v26 = vpop.f32.mrb[0].mxu1 }
 0x178   : > { %v1409_v28 = vpop.f32.mrb[1].mxu0  ;;  %v1421_v30 = vpop.f32.mrb[1].mxu1 }
 0x179   : > { %v1410_v31 = vadd.f32 %v1409_v28, %v1408_v25  ;;  %v1422_v32 = vadd.f32 %v1421_v30, %v1420_v26  ;;  %v1411_v33 = vpop.f32.mrb[2].mxu0  ;;  %v1423_v34 = vpop.f32.mrb[2].mxu1 }
 0x17a   : > { %v1412_v36 = vpop.f32.mrb[3].mxu0  ;;  %v1424_v38 = vpop.f32.mrb[3].mxu1 }
 0x17b   : > { %v757_v39 = vadd.f32 %v1410_v31, %v508_v27  ;;  %v761_v40 = vadd.f32 %v1422_v32, %v512_v29  ;;  %v1413_v41 = vadd.f32 %v1412_v36, %v1411_v33  ;;  %v1425_v42 = vadd.f32 %v1424_v38, %v1423_v34 }
 0x17d   : > { %766 = vst.msk [vmem:[#allocation2] sm:$0xff] %vm765_vm1, %v757_v39  ;;  %770 = vst.msk [vmem:[#allocation2 + $0x20] sm:$0xff] %vm765_vm1, %v761_v40  ;;  %v758_v43 = vadd.f32 %v1413_v41, %v509_v35  ;;  %v762_v44 = vadd.f32 %v1425_v42, %v513_v37 }
 0x17f   : > { %767 = vst.msk [vmem:[#allocation2 + $0x8] sm:$0xff] %vm765_vm1, %v758_v43  ;;  %771 = vst.msk [vmem:[#allocation2 + $0x28] sm:$0xff] %vm765_vm1, %v762_v44  ;;  %v1414_v45 = vpop.f32.mrb[4].mxu0  ;;  %v1426_v46 = vpop.f32.mrb[4].mxu1 }
 0x180   : > { %v1415_v48 = vpop.f32.mrb[5].mxu0  ;;  %v1427_v50 = vpop.f32.mrb[5].mxu1 }
 0x181   : > { %v1416_v51 = vadd.f32 %v1415_v48, %v1414_v45  ;;  %v1428_v52 = vadd.f32 %v1427_v50, %v1426_v46  ;;  %v1417_v53 = vpop.f32.mrb[6].mxu0  ;;  %v1429_v54 = vpop.f32.mrb[6].mxu1 }
 0x182   : > { %v1418_v56 = vpop.f32.mrb[7].mxu0  ;;  %v1430_v58 = vpop.f32.mrb[7].mxu1 }
 0x183   : > { %v759_v59 = vadd.f32 %v1416_v51, %v510_v47  ;;  %v763_v60 = vadd.f32 %v1428_v52, %v514_v49  ;;  %v1419_v61 = vadd.f32 %v1418_v56, %v1417_v53  ;;  %v1431_v62 = vadd.f32 %v1430_v58, %v1429_v54 }
 0x185   : > { %768 = vst.msk [vmem:[#allocation2 + $0x10] sm:$0xff] %vm765_vm1, %v759_v59  ;;  %772 = vst.msk [vmem:[#allocation2 + $0x30] sm:$0xff] %vm765_vm1, %v763_v60  ;;  %v760_v63 = vadd.f32 %v1419_v61, %v511_v55  ;;  %v764_v0 = vadd.f32 %v1431_v62, %v515_v57 }
 0x187   : > { %769 = vst.msk [vmem:[#allocation2 + $0x18] sm:$0xff] %vm765_vm1, %v760_v63  ;;  %773 = vst.msk [vmem:[#allocation2 + $0x38] sm:$0xff] %vm765_vm1, %v764_v0 }
 0x188 PF: > { %p1316_p5 = scmp.ne.s32.totalorder %s1891_s5, 1 }
 0x189   : > { %v821_v1 = vld [vmem:[%s2358_s6] sm:$0xff] (!%p1316_p5)  ;;  %s786_s19 = sld [smem:[#allocation6]] (!%p1316_p5)  ;;  %v1386_v3 = vld [vmem:[%s2164_s13 + $0x8] sm:$0xff] (!%p1316_p5)   ;;  %v1387_v4 = vld [vmem:[%s2164_s13 + $0x10] sm:$0xff] (!%p1316_p5)   ;;  %vm829_vm2 = vcmask (!%p1316_p5), 64512  }
 0x18a   : > { %777 = sbr.rel (%p1316_p5) target bundleno = 857 (0x359), region = 68  ;;  %1465 = vmatprep.subr.mxu0 (!%p1316_p5), %v821_v1  ;;  %v1351_v2 = vld [vmem:[%s2164_s13] sm:$0xff] (!%p1316_p5)   ;;  %v968_v6 = vld [vmem:[%s2360_s8 + $0x8] sm:$0xff] (!%p1316_p5)  ;;  %v1356_v9 = vunpack.c.l.bf16 (!%p1316_p5), %v1386_v3  ;;  %v969_v11 = vld [vmem:[%s2360_s8 + $0x10] sm:$0xff] (!%p1316_p5)  ;;  %v1357_v13 = vunpack.c.h.bf16 (!%p1316_p5), %v1386_v3  ;;  %v1360_v14 = vunpack.c.l.bf16 (!%p1316_p5), %v1387_v4  ;;  %v1361_v27 = vunpack.c.h.bf16 (!%p1316_p5), %v1387_v4 }
 0x18b   : > { %1466 = vmatpush3.msra.mxu0 (!%p1316_p5), %v821_v1  ;;  %v967_v5 = vld [vmem:[%s2360_s8] sm:$0xff] (!%p1316_p5)  ;;  %v1352_v7 = vunpack.c.l.bf16 (!%p1316_p5), %v1351_v2  ;;  %v1353_v8 = vunpack.c.h.bf16 (!%p1316_p5), %v1351_v2  ;;  %v970_v12 = vld [vmem:[%s2360_s8 + $0x18] sm:$0xff] (!%p1316_p5)  ;;  %v972_v18 = vld [vmem:[%s2360_s8 + $0x28] sm:$0xff] (!%p1316_p5) }
 0x18c   : > { %v1523_v10 = vpack.c.bf16 (!%p1316_p5), %v968_v6, %v967_v5  ;;  %v1388_v15 = vld [vmem:[%s2164_s13 + $0x18] sm:$0xff] (!%p1316_p5)   ;;  %v1527_v16 = vpack.c.bf16 (!%p1316_p5), %v970_v12, %v969_v11  ;;  %v971_v17 = vld [vmem:[%s2360_s8 + $0x20] sm:$0xff] (!%p1316_p5)  ;;  %v779_v21 = vld [vmem:[#allocation2 + $0x8] sm:$0xff] (!%p1316_p5) }
 0x18d   : > { %v778_v19 = vld [vmem:[#allocation2] sm:$0xff] (!%p1316_p5)  ;;  %v780_v22 = vld [vmem:[#allocation2 + $0x10] sm:$0xff] (!%p1316_p5)  ;;  %v1364_v28 = vunpack.c.l.bf16 (!%p1316_p5), %v1388_v15  ;;  %v1531_v29 = vpack.c.bf16 (!%p1316_p5), %v972_v18, %v971_v17  ;;  %v974_v37 = vld [vmem:[%s2360_s8 + $0x38] sm:$0xff] (!%p1316_p5)  ;;  %v1365_v40 = vunpack.c.h.bf16 (!%p1316_p5), %v1388_v15 }
 0x18e   : > { %1524 = vmatprep.subr.bf16.mxu0 (!%p1316_p5), %v1523_v10  ;;  %1571 = vmatprep.subr.bf16.mxu1 (!%p1316_p5), %v1523_v10  ;;  %v781_v33 = vld [vmem:[#allocation2 + $0x18] sm:$0xff] (!%p1316_p5)  ;;  %v782_v35 = vld [vmem:[#allocation2 + $0x20] sm:$0xff] (!%p1316_p5)  ;;  %v973_v36 = vld [vmem:[%s2360_s8 + $0x30] sm:$0xff] (!%p1316_p5) }
 0x18f   : > { %s787_s28 = sadd.f32 (!%p1316_p5), 1.0, %s786_s19  ;;  %1579 = vmatpush3.bf16.msra.mxu1 (!%p1316_p5), %v1523_v10  ;;  %v783_v42 = vld [vmem:[#allocation2 + $0x28] sm:$0xff] (!%p1316_p5)  ;;  %v1535_v44 = vpack.c.bf16 (!%p1316_p5), %v974_v37, %v973_v36  ;;  %v784_v45 = vld [vmem:[#allocation2 + $0x30] sm:$0xff] (!%p1316_p5)  ;;  %v975_v46 = vld [vmem:[%s2360_s8 + $0x40] sm:$0xff] (!%p1316_p5) }
 0x190   : > { %1572 = vmatprep.subr.bf16.mxu1 (!%p1316_p5), %v1527_v16  ;;  %v976_v47 = vld [vmem:[%s2360_s8 + $0x48] sm:$0xff] (!%p1316_p5)  ;;  %v785_v51 = vld [vmem:[#allocation2 + $0x38] sm:$0xff] (!%p1316_p5)  ;;  %v977_v53 = vld [vmem:[%s2360_s8 + $0x50] sm:$0xff] (!%p1316_p5) }
 0x191   : > { %v804_v20 = vstv %s787_s28  ;;  %v1539_v52 = vpack.c.bf16 %v976_v47, %v975_v46  ;;  %v978_v54 = vld [vmem:[%s2360_s8 + $0x58] sm:$0xff]  ;;  %v979_v57 = vld [vmem:[%s2360_s8 + $0x60] sm:$0xff]  ;;  %v980_v58 = vld [vmem:[%s2360_s8 + $0x68] sm:$0xff] }
 0x192   : > { %v805_v23 = vmul.f32 %v1352_v7, %v804_v20  ;;  %v806_v24 = vmul.f32 %v1353_v8, %v804_v20  ;;  %v807_v25 = vmul.f32 %v1356_v9, %v804_v20  ;;  %v808_v26 = vmul.f32 %v1357_v13, %v804_v20  ;;  %v981_v60 = vld [vmem:[%s2360_s8 + $0x70] sm:$0xff]  ;;  %v982_v61 = vld [vmem:[%s2360_s8 + $0x78] sm:$0xff]  ;;  %v1317_v63 = vld [vmem:[%s2359_s7] ss:$0 sm:$0xff] }
 0x193   : > { %v809_v34 = vmul.f32 %v1360_v14, %v804_v20  ;;  %1580 = vmatpush3.bf16.msra.mxu1 %v1527_v16  ;;  %v810_v39 = vmul.f32 %v1361_v27, %v804_v20  ;;  %v811_v43 = vmul.f32 %v1364_v28, %v804_v20  ;;  %v812_v49 = vmul.f32 %v1365_v40, %v804_v20 }
 0x194   : > { %v813_v30 = vadd.f32 %v805_v23, %v778_v19  ;;  %v814_v31 = vadd.f32 %v806_v24, %v779_v21  ;;  %v815_v32 = vadd.f32 %v807_v25, %v780_v22  ;;  %1573 = vmatprep.subr.bf16.mxu1 %v1531_v29  ;;  %v816_v38 = vadd.f32 %v808_v26, %v781_v33  ;;  %v1326_v24 = vld [vmem:[%s2361_s9] ss:$0 sm:$0xff] }
 0x195   : > { %v817_v41 = vadd.f32 %v809_v34, %v782_v35  ;;  %v818_v48 = vadd.f32 %v810_v39, %v783_v42  ;;  %v819_v50 = vadd.f32 %v811_v43, %v784_v45  ;;  %v820_v55 = vadd.f32 %v812_v49, %v785_v51 }
 0x196   : > { %1467 = vmatprep.mubr.msk.f32.mxu0 %vm829_vm2, %v813_v30  ;;  %v1543_v56 = vpack.c.bf16 %v978_v54, %v977_v53  ;;  %v1547_v59 = vpack.c.bf16 %v980_v58, %v979_v57  ;;  %v1551_v62 = vpack.c.bf16 %v982_v61, %v981_v60 }
 0x197   : > { %1468 = vmatmul.mubr.msk.f32.vlgmr.msra.gmra.mrb[0].mxu0 %vm829_vm2, %v814_v31  ;;  %1581 = vmatpush3.bf16.msra.mxu1 %v1531_v29 }
 0x198   : > { %1470 = vmatprep.mubr.msk.f32.mxu0 %vm829_vm2, %v815_v32  ;;  %1526 = vmatpush3.bf16.msra.mxu0 %v1523_v10 }
 0x199   : > { %1528 = vmatprep.subr.bf16.mxu0 %v1527_v16  ;;  %1574 = vmatprep.subr.bf16.mxu1 %v1535_v44 }
 0x19b   : > { %1471 = vmatmul.mubr.msk.f32.gmra.mrb[2].mxu0 %vm829_vm2, %v816_v38  ;;  %1582 = vmatpush3.bf16.msra.mxu1 %v1535_v44 }
 0x19c   : > { %1473 = vmatprep.mubr.msk.f32.mxu0 %vm829_vm2, %v817_v41  ;;  %1530 = vmatpush3.bf16.msra.mxu0 %v1527_v16 }
 0x19d   : > { %1532 = vmatprep.subr.bf16.mxu0 %v1531_v29  ;;  %1575 = vmatprep.subr.bf16.mxu1 %v1539_v52 }
 0x19f   : > { %1474 = vmatmul.mubr.msk.f32.gmra.mrb[4].mxu0 %vm829_vm2, %v818_v48  ;;  %1583 = vmatpush3.bf16.msra.mxu1 %v1539_v52 }
 0x1a0   : > { %1476 = vmatprep.mubr.msk.f32.mxu0 %vm829_vm2, %v819_v50  ;;  %1534 = vmatpush3.bf16.msra.mxu0 %v1531_v29 }
 0x1a1   : > { %1536 = vmatprep.subr.bf16.mxu0 %v1535_v44  ;;  %1576 = vmatprep.subr.bf16.mxu1 %v1543_v56 }
 0x1a3   : > { %1477 = vmatmul.mubr.msk.f32.gmra.mrb[6].mxu0 %vm829_vm2, %v820_v55  ;;  %1584 = vmatpush3.bf16.msra.mxu1 %v1543_v56 }
 0x1a4   : > { %1538 = vmatpush3.bf16.msra.mxu0 %v1535_v44  ;;  %1577 = vmatprep.subr.bf16.mxu1 %v1547_v59 }
 0x1a5   : > { %1540 = vmatprep.subr.bf16.mxu0 %v1539_v52 }
 0x1a7   : > { %1585 = vmatpush3.bf16.msra.mxu1 %v1547_v59 }
 0x1a8   : > { %1542 = vmatpush3.bf16.msra.mxu0 %v1539_v52  ;;  %1578 = vmatprep.subr.bf16.mxu1 %v1551_v62 }
 0x1a9   : > { %1544 = vmatprep.subr.bf16.mxu0 %v1543_v56 }
 0x1ab   : > { %1586 = vmatpush3.bf16.msra.mxu1 %v1551_v62 }
 0x1ac   : > { %1546 = vmatpush3.bf16.msra.mxu0 %v1543_v56 }
 0x1ad   : > { %1548 = vmatprep.subr.bf16.mxu0 %v1547_v59 }
 0x1b0   : > { %1550 = vmatpush3.bf16.msra.mxu0 %v1547_v59 }
 0x1b1   : > { %1552 = vmatprep.subr.bf16.mxu0 %v1551_v62 }
 0x1b4   : > { %1554 = vmatpush3.bf16.msra.mxu0 %v1551_v62 }
 0x26a   : > { %v1469_v0 = vpop.f32.mrb[0].mxu0 }
 0x26b   : > { %v926_v1 = vadd.f32 %v1469_v0, %v1317_v63  ;;  %v920_v2 = vpop.f32.mrb[1].mxu0 }
 0x26c   : > { %v921_v3 = vadd.f32 %v1317_v63, %v920_v2 }
 0x26d   : > { %v960_v6 = vmax.f32 %v926_v1, 0.0 }
 0x26e   : > { %v959_v4 = vmax.f32 %v921_v3, 0.0  ;;  %v1472_v5 = vpop.f32.mrb[2].mxu0 }
 0x26f   : > { %v936_v7 = vadd.f32 %v1472_v5, %v1317_v63  ;;  %v930_v8 = vpop.f32.mrb[3].mxu0 }
 0x270   : > { %1511 = vmatprep.mubr.f32.mxu0 %v959_v4  ;;  %v931_v9 = vadd.f32 %v1317_v63, %v930_v8 }
 0x271   : > { %1512 = vmatmul.mubr.f32.vlgmr.msra.gmra.mrb[8].mxu0 %v960_v6  ;;  %v962_v12 = vmax.f32 %v936_v7, 0.0 }
 0x272   : > { %v1475_v10 = vpop.f32.mrb[4].mxu0  ;;  %v961_v11 = vmax.f32 %v931_v9, 0.0 }
 0x273   : > { %v946_v13 = vadd.f32 %v1475_v10, %v1317_v63  ;;  %v940_v14 = vpop.f32.mrb[5].mxu0 }
 0x274   : > { %v941_v15 = vadd.f32 %v1317_v63, %v940_v14  ;;  %1514 = vmatprep.mubr.f32.mxu1 %v961_v11 }
 0x275   : > { %1515 = vmatmul.mubr.f32.vlgmr.msra.gmra.mrb[0].mxu1 %v962_v12  ;;  %v964_v18 = vmax.f32 %v946_v13, 0.0 }
 0x276   : > { %v963_v16 = vmax.f32 %v941_v15, 0.0  ;;  %v1478_v17 = vpop.f32.mrb[6].mxu0 }
 0x277   : > { %v956_v19 = vadd.f32 %v1478_v17, %v1317_v63  ;;  %v950_v20 = vpop.f32.mrb[7].mxu0 }
 0x278   : > { %v951_v21 = vadd.f32 %v1317_v63, %v950_v20  ;;  %1517 = vmatprep.mubr.f32.mxu1 %v963_v16 }
 0x279   : > { %1518 = vmatmul.mubr.f32.gmra.mrb[2].mxu1 %v964_v18  ;;  %v966_v23 = vmax.f32 %v956_v19, 0.0 }
 0x27a   : > { %v965_v22 = vmax.f32 %v951_v21, 0.0 }
 0x27c   : > { %1520 = vmatprep.mubr.f32.mxu1 %v965_v22 }
 0x27d   : > { %1521 = vmatmul.mubr.f32.gmra.mrb[4].mxu1 %v966_v23 }
 0x344   : > { %v1513_v25 = vpop.f32.mrb[8].mxu0 }
 0x345   : > { %v1062_v26 = vadd.f32 %v1513_v25, %v1326_v24  ;;  %v1056_v27 = vpop.f32.mrb[9].mxu0 }
 0x346   : > { %v1057_v28 = vadd.f32 %v1326_v24, %v1056_v27 }
 0x347   : > { %v1096_v29 = vmax.f32 %v1062_v26, 0.0 }
 0x348   : > { %v1095_v30 = vmax.f32 %v1057_v28, 0.0  ;;  %v1516_v31 = vpop.f32.mrb[0].mxu1 }
 0x349   : > { %v1072_v32 = vadd.f32 %v1516_v31, %v1326_v24  ;;  %v1066_v33 = vpop.f32.mrb[1].mxu1 }
 0x34a   : > { %v1369_v34 = vpack.c.bf16 %v1096_v29, %v1095_v30  ;;  %v1067_v35 = vadd.f32 %v1326_v24, %v1066_v33 }
 0x34b   : > { %v1098_v36 = vmax.f32 %v1072_v32, 0.0 }
 0x34c   : > { %1370 = vst [vmem:[%s2171_s30] sm:$0xff] %v1369_v34   ;;  %v1097_v37 = vmax.f32 %v1067_v35, 0.0  ;;  %v1519_v38 = vpop.f32.mrb[2].mxu1 }
 0x34d   : > { %v1082_v39 = vadd.f32 %v1519_v38, %v1326_v24  ;;  %v1076_v40 = vpop.f32.mrb[3].mxu1 }
 0x34e   : > { %v1374_v41 = vpack.c.bf16 %v1098_v36, %v1097_v37  ;;  %v1077_v42 = vadd.f32 %v1326_v24, %v1076_v40 }
 0x34f   : > { %v1100_v43 = vmax.f32 %v1082_v39, 0.0 }
 0x350   : > { %1389 = vst [vmem:[%s2171_s30 + $0x8] sm:$0xff] %v1374_v41   ;;  %v1099_v44 = vmax.f32 %v1077_v42, 0.0  ;;  %v1522_v45 = vpop.f32.mrb[4].mxu1 }
 0x351   : > { %v1092_v46 = vadd.f32 %v1522_v45, %v1326_v24  ;;  %v1086_v47 = vpop.f32.mrb[5].mxu1 }
 0x352   : > { %v1379_v48 = vpack.c.bf16 %v1100_v43, %v1099_v44  ;;  %v1087_v49 = vadd.f32 %v1326_v24, %v1086_v47 }
 0x353   : > { %v1102_v50 = vmax.f32 %v1092_v46, 0.0 }
 0x354   : > { %1390 = vst [vmem:[%s2171_s30 + $0x10] sm:$0xff] %v1379_v48   ;;  %v1101_v51 = vmax.f32 %v1087_v49, 0.0 }
 0x356   : > { %v1384_v52 = vpack.c.bf16 %v1102_v50, %v1101_v51 }
 0x358   : > { %1391 = vst [vmem:[%s2171_s30 + $0x18] sm:$0xff] %v1384_v52  }
 0x359 PF: > { %s1349_s21 = sshll.u32 %s1895_s29, 9  ;;  %s2393_s28 = sld [smem:[#allocation25_spill]] }
 0x35a   : > { %s1157_s15 = sshll.u32 %s2171_s30, 4  ;;  %s2293_s20 = scalar_lea.sflag [#allocation9], %s447_s16  ;;  %s2289_s15 = int_to_ptr.vmem [resolvable:$true] %s1157_s15 }
 0x35b   : > { %s1783_s13 = scalar_lea.vmem %s2289_s15, 512  ;;  %p2395_p2 = scmp.ne.s32.totalorder %s2386_s22, 0 }
 0x35c   : > { %p1784_p8 = scmp.ne.s32.totalorder %s2289_s15, %s1783_s13  ;;  %s1916_s29 = smov [#allocation10]  }
 0x35d   : > { %s1787_s14 = sshll.u32 %s1916_s29, 4  ;;  %s1788_s14 = int_to_ptr.vmem [resolvable:$false] %s1787_s14 }
 0x35e   : > { %p1785_p12 = pnand %p1784_p8, %p2395_p2  ;;  %s1789_s19 = scalar_lea.vmem %s1788_s14, 1024 }
 0x35f   : > { %s2394_s18 = smov %s2393_s28  ;;  %s2286_s23 = scalar_lea.hbm %s2393_s28, %s1349_s21 }
 0x360   : > { %p1786_p3 = pneg %p1785_p12  ;;  %p1790_p7 = scmp.lt.s32.totalorder %s2289_s15, %s1788_s14 }
 0x361   : > { %p1791_p9 = scmp.lt.s32.totalorder %s1789_s19, %s1783_s13 }
 0x363   : > { %p1792_p11 = por %p1791_p9, %p1790_p7 }
 0x365   : > { %p1793_p13 = pnand %p1792_p11, %p1786_p3 }
 0x367   : > { %1796 = shalt.err (!%p1793_p13)
}
 0x368   : > { %s1797_s16 = scalar_lea.hbm %s2286_s23, 512  ;;  %s1801_s10 = scalar_lea.hbm %s2394_s18, 4096 }
 0x369   : > { %p1798_p4 = scmp.ne.s32.totalorder %s2286_s23, %s1797_s16  ;;  %p1802_p1 = scmp.lt.u32.totalorder %s2286_s23, %s2394_s18 }
 0x36a   : > { %p1803_p0 = scmp.lt.u32.totalorder %s1801_s10, %s1797_s16  ;;  %p1805_p8 = scmp.lt.u32.totalorder %s1797_s16, %s2286_s23 }
 0x36b   : > { %p1799_p6 = pnand %p1798_p4, %p2395_p2 }
 0x36c   : > { %p1804_p5 = por %p1803_p0, %p1802_p1 }
 0x36d   : > { %p1800_p10 = pneg %p1799_p6 }
 0x36e   : > { %p1806_p12 = por %p1805_p8, %p1804_p5 }
 0x370   : > { %p1807_p3 = pnand %p1806_p12, %p1800_p10 }
 0x372   : > { %1810 = shalt.err (!%p1807_p3)
}
 0x373   : > { %s1917_s17 = smov 64   ;;  %s1918_s21 = smov 4  }
 0x374   : > { %1591 = dma.vmem_to_hbm [thread:$0]  (%p2395_p2), %s2289_s15, 512, %s2286_s23, %s2293_s20, %s1917_s17, %s1917_s17, %s1918_s21  }
 0x375 PF: > { %s2396_s26 = sld [smem:[#allocation16_spill]]  ;;  %s2397_s25 = sld [smem:[#allocation23_spill]] }
 0x376   : > { %p1604_p7 = scmp.ge.s32.totalorder %s1907_s12, 2 }
 0x37b   : > { %s1172_s28 = sand.u32 1, %s2396_s26   ;;  %p2398_p9 = scmp.ne.s32.totalorder %s2397_s25, 0 }
 0x37c   : > { %s1173_s13 = scalar_lea.sflag [#allocation9], %s1172_s28 }
 0x37d   : > { %p1600_p11 = pnand %p1604_p7, %p2398_p9 }
 0x37f   : > { %1862 = dma.done.wait (!%p1600_p11), %s1173_s13, 512  }
 0x380   : > { %1864 = vsyncadd (!%p1600_p11), %s1173_s13, 4294966784  ;;  %s37_s12 = sadd.s32 1, %s1907_s12   ;;  %s2399_s29 = sld [smem:[#allocation17_spill]] }
 0x381   : > { %p34_p13 = scmp.ge.s32.totalorder %s37_s12, 18   ;;  %s2400_s25 = sld [smem:[#allocation22_spill]] }
 0x382   : > { %s2401_s22 = sld [smem:[#allocation18_spill]]  ;;  %s2402_s28 = sld [smem:[#allocation24_spill]] }
 0x383   : > { %s2403_s5 = sld [smem:[#allocation19_spill]]  ;;  %s2404_s30 = sld [smem:[#allocation20_spill]] }
 0x384   : > { %s2405_s15 = sld [smem:[#allocation21_spill]]  ;;  %s2406_s23 = smov %s1871_s24 }
 0x385   : > { %s2408_s26 = smov %s1883_s27  ;;  %36 = sbr.rel (!%p34_p13) target bundleno = 35 (0x23), region = 115 }
 0x386   : > { %s2407_s24 = smov %s2399_s29  ;;  %s2410_s29 = smov %s1903_s11 }
 0x388   : > { %s2409_s27 = smov %s2401_s22 }
 0x38a   : > { %s2411_s11 = smov %s2405_s15 }
 0x38c   :  { %1178 = vsyncpa [#allocation8], 1 }
 0x38d   :  { %1180 = vsyncpa [#allocation8 + $0x1], 1 }
 0x38e   :  { %1181 = vsyncpa [#allocation9], 1 }
 0x38f   :  { %1183 = vsyncpa [#allocation9 + $0x1], 1 }

</bundles_post_ra>
